<compile_context>
chip_gen: v5e
topology: v5e:2x2
jax: 0.10.0
libtpu: 0.0.40
codegen_flags: <defaults>
</compile_context>

<pallas_src>
import functools

import jax
import jax.numpy as jnp
from jax import lax
from jax.experimental import pallas as pl
from jax.experimental.pallas import tpu as pltpu


def _pick_hw_tile(hw, c, *, max_bytes=2 << 20):
    """Largest multiple-of-128 divisor of hw whose (c, tile) f32 block fits the budget.

    Keeps the per-block footprint small enough that double-buffered in/out blocks
    stay well under the default scoped-VMEM limit (important on v7x's 64 MiB VMEM).
    Falls back to a full-extent block when hw is not a multiple of 128 (legal:
    block equals the array dim) so padded lanes never contaminate the statistics.
    """
    if hw % 128 != 0:
        return hw
    best = 128
    t = 128
    while t <= hw:
        if hw % t == 0 and c * t * 4 <= max_bytes:
            best = t
        t += 128
    return best


def _bn_stats_kernel(x_ref, gamma_ref, beta_ref, ab_ref, *, eps, inv_count):
    # x_ref:     (1, C, Thw)   one batch element, one HW tile
    # gamma_ref: (1, C, 1)     resident (same block index every step -> no re-DMA)
    # beta_ref:  (1, C, 1)
    # ab_ref:    (2, C, 1)     resident output block; rows: [sum, sumsq] -> [a, b]
    i = pl.program_id(0)
    j = pl.program_id(1)
    is_first = jnp.logical_and(i == 0, j == 0)
    is_last = jnp.logical_and(i == pl.num_programs(0) - 1,
                              j == pl.num_programs(1) - 1)

    @pl.when(is_first)
    def _():
        ab_ref[...] = jnp.zeros_like(ab_ref)

    xf = x_ref[...].astype(jnp.float32)                            # (1, C, Thw)
    ab_ref[0:1, :, :] += jnp.sum(xf, axis=2, keepdims=True)        # per-channel sum
    ab_ref[1:2, :, :] += jnp.sum(xf * xf, axis=2, keepdims=True)   # per-channel sumsq

    @pl.when(is_last)
    def _():
        mean = ab_ref[0:1, :, :] * inv_count                       # (1, C, 1)
        ex2 = ab_ref[1:2, :, :] * inv_count
        var = jnp.maximum(ex2 - mean * mean, 0.0)                  # biased var, clamp cancellation
        a = gamma_ref[...] * lax.rsqrt(var + eps)                  # fold affine: y = x*a + b
        b = beta_ref[...] - mean * a
        ab_ref[0:1, :, :] = a
        ab_ref[1:2, :, :] = b


def _bn_norm_kernel(ab_ref, x_ref, o_ref):
    # ab_ref: (2, C, 1) resident per-channel constants (a, b)
    # x_ref:  (1, C, Thw) ; o_ref: (1, C, Thw)  -- lane-dense stores
    a = ab_ref[0:1, :, :]
    b = ab_ref[1:2, :, :]
    o_ref[...] = (x_ref[...].astype(jnp.float32) * a + b).astype(o_ref.dtype)


def dynamic_batch_norm_2d(x_nchw, gamma_full, beta_full, *, eps=1e-5):
    """Forward of DynamicBatchNorm2d (weight_sharing=True, training-mode BN).

    x_nchw:      (N, C_act, H, W)  -- C_act may be smaller than len(gamma_full)
    gamma_full:  (C_max,)          -- shared BN weight (max_feature_dim)
    beta_full:   (C_max,)          -- shared BN bias   (max_feature_dim)
    """
    n, c, h, w = x_nchw.shape
    hw = h * w

    # Slice shared params to the active feature dim (bn.weight[:feature_dim]).
    gamma = gamma_full[:c].astype(jnp.float32).reshape(1, c, 1)
    beta = beta_full[:c].astype(jnp.float32).reshape(1, c, 1)

    # Free view of NCHW: channels on sublanes, H*W on the lane axis.
    x3d = x_nchw.reshape(n, c, hw)

    thw = _pick_hw_tile(hw, c)
    grid = (n, hw // thw)
    inv_count = 1.0 / float(n * hw)

    # ---- Phase 1: per-channel statistics -> folded (a, b) constants ----------
    ab = pl.pallas_call(
        functools.partial(_bn_stats_kernel, eps=eps, inv_count=inv_count),
        out_shape=jax.ShapeDtypeStruct((2, c, 1), jnp.float32),
        grid_spec=pltpu.PrefetchScalarGridSpec(
            num_scalar_prefetch=0,
            grid=grid,
            in_specs=[
                pl.BlockSpec((1, c, thw), lambda i, j: (i, 0, j)),
                pl.BlockSpec((1, c, 1), lambda i, j: (0, 0, 0)),
                pl.BlockSpec((1, c, 1), lambda i, j: (0, 0, 0)),
            ],
            out_specs=pl.BlockSpec((2, c, 1), lambda i, j: (0, 0, 0)),
        ),
        compiler_params=pltpu.CompilerParams(
            # Output accumulates across both axes -> must be "arbitrary".
            dimension_semantics=("arbitrary", "arbitrary"),
        ),
    )(x3d, gamma, beta)

    # ---- Phase 2: normalize y = x * a + b ------------------------------------
    y3d = pl.pallas_call(
        _bn_norm_kernel,
        out_shape=jax.ShapeDtypeStruct((n, c, hw), x_nchw.dtype),
        grid_spec=pltpu.PrefetchScalarGridSpec(
            num_scalar_prefetch=0,
            grid=grid,
            in_specs=[
                pl.BlockSpec((2, c, 1), lambda i, j: (0, 0, 0)),
                pl.BlockSpec((1, c, thw), lambda i, j: (i, 0, j)),
            ],
            out_specs=pl.BlockSpec((1, c, thw), lambda i, j: (i, 0, j)),
        ),
        compiler_params=pltpu.CompilerParams(
            # Each output tile written once -> parallel; lets v7x megacore shard.
            dimension_semantics=("parallel", "parallel"),
        ),
    )(ab, x3d)

    return y3d.reshape(n, c, h, w)


def _reference(x_nchw, gamma_full, beta_full, eps=1e-5):
    c = x_nchw.shape[1]
    xf = x_nchw.astype(jnp.float32)
    mean = jnp.mean(xf, axis=(0, 2, 3), keepdims=True)
    var = jnp.mean((xf - mean) ** 2, axis=(0, 2, 3), keepdims=True)
    g = gamma_full[:c].reshape(1, c, 1, 1)
    b = beta_full[:c].reshape(1, c, 1, 1)
    return ((xf - mean) * lax.rsqrt(var + eps) * g + b).astype(x_nchw.dtype)


if __name__ == "__main__":
    # DynamicBatchNorm2d(feature_list=[4, 8], weight_sharing=True):
    # shared BN has max_feature_dim = 8 params; input uses feature_dim = 4.
    feature_list = [4, 8]
    max_feature_dim = max(feature_list)

    key = jax.random.PRNGKey(0)
    kx, kg, kb = jax.random.split(key, 3)

    N, C, H, W = 2, 4, 16, 16
    x = jax.random.normal(kx, (N, C, H, W), dtype=jnp.float32)
    gamma_full = 1.0 + 0.1 * jax.random.normal(kg, (max_feature_dim,), dtype=jnp.float32)
    beta_full = 0.1 * jax.random.normal(kb, (max_feature_dim,), dtype=jnp.float32)

    y = dynamic_batch_norm_2d(x, gamma_full, beta_full)
    y = jax.block_until_ready(y)

    y_ref = _reference(x, gamma_full, beta_full)
    assert y.shape == (N, C, H, W)
    assert jnp.allclose(y, y_ref, atol=1e-4, rtol=1e-4), "mismatch vs reference"

    print("KERNEL_OK")
</pallas_src>

<mosaic_0001>
module attributes {stable_mosaic.version = 11 : i64} {
  func.func @_bn_stats_kernel(%arg0: i32, %arg1: i32, %arg2: memref<1x4x256xf32, #tpu.memory_space<vmem>>, %arg3: memref<1x4x1xf32, #tpu.memory_space<vmem>>, %arg4: memref<1x4x1xf32, #tpu.memory_space<vmem>>, %arg5: memref<2x4x1xf32, #tpu.memory_space<vmem>>) attributes {dimension_semantics = [#tpu.dimension_semantics<arbitrary>, #tpu.dimension_semantics<arbitrary>], iteration_bounds = array<i64: 2, 1>, scalar_prefetch = 0 : i64, scratch_operands = 0 : i64, tpu.core_type = #tpu.core_type<tc>, window_params = [{transform_indices = @transform_0, window_bounds = array<i64: 1, 4, 256>}, {pipeline_mode = #tpu.pipeline_mode<synchronous>, transform_indices = @transform_1, window_bounds = array<i64: 1, 4, 1>}, {pipeline_mode = #tpu.pipeline_mode<synchronous>, transform_indices = @transform_2, window_bounds = array<i64: 1, 4, 1>}, {pipeline_mode = #tpu.pipeline_mode<synchronous>, transform_indices = @transform_3, window_bounds = array<i64: 2, 4, 1>}]} {
    %c0_i32 = arith.constant 0 : i32
    %0 = arith.cmpi eq, %arg0, %c0_i32 : i32
    %c0_i32_0 = arith.constant 0 : i32
    %1 = arith.cmpi eq, %arg1, %c0_i32_0 : i32
    %2 = arith.andi %0, %1 : i1
    %c1_i32 = arith.constant 1 : i32
    %3 = arith.cmpi eq, %arg0, %c1_i32 : i32
    %c0_i32_1 = arith.constant 0 : i32
    %4 = arith.cmpi eq, %arg1, %c0_i32_1 : i32
    %5 = arith.andi %3, %4 : i1
    %6 = arith.extui %2 : i1 to i32
    %c0_i32_2 = arith.constant 0 : i32
    %7 = arith.cmpi ne, %6, %c0_i32_2 : i32
    scf.if %7 {
      %cst_18 = arith.constant 0.000000e+00 : f32
      %22 = vector.broadcast %cst_18 : f32 to vector<2x4x1xf32>
      %c0_19 = arith.constant 0 : index
      %c0_20 = arith.constant 0 : index
      %c0_21 = arith.constant 0 : index
      %23 = vector.load %arg5[%c0_19, %c0_20, %c0_21] : memref<2x4x1xf32, #tpu.memory_space<vmem>>, vector<2x4x1xf32>
      tpu.vector_store %arg5[%c0_19, %c0_20, %c0_21], %22 {strides = array<i32>} : memref<2x4x1xf32, #tpu.memory_space<vmem>>, vector<2x4x1xf32>,
    } else {
    }
    %c0 = arith.constant 0 : index
    %c0_3 = arith.constant 0 : index
    %c0_4 = arith.constant 0 : index
    %8 = vector.load %arg2[%c0, %c0_3, %c0_4] : memref<1x4x256xf32, #tpu.memory_space<vmem>>, vector<1x4x256xf32>
    %c0_5 = arith.constant 0 : index
    %c0_6 = arith.constant 0 : index
    %c0_7 = arith.constant 0 : index
    %9 = vector.load %arg5[%c0_5, %c0_6, %c0_7] : memref<2x4x1xf32, #tpu.memory_space<vmem>>, vector<1x4x1xf32>
    %cst = arith.constant dense<0.000000e+00> : vector<1x4xf32>
    %10 = vector.multi_reduction <add>, %8, %cst [2] : vector<1x4x256xf32> to vector<1x4xf32>
    %11 = vector.shape_cast %10 : vector<1x4xf32> to vector<1x4x1xf32>
    %12 = arith.addf %9, %11 : vector<1x4x1xf32>
    %c0_8 = arith.constant 0 : index
    %c0_9 = arith.constant 0 : index
    %c0_10 = arith.constant 0 : index
    %13 = vector.load %arg5[%c0_8, %c0_9, %c0_10] : memref<2x4x1xf32, #tpu.memory_space<vmem>>, vector<1x4x1xf32>
    tpu.vector_store %arg5[%c0_8, %c0_9, %c0_10], %12 {strides = array<i32>} : memref<2x4x1xf32, #tpu.memory_space<vmem>>, vector<1x4x1xf32>,
    %c1 = arith.constant 1 : index
    %c0_11 = arith.constant 0 : index
    %c0_12 = arith.constant 0 : index
    %14 = vector.load %arg5[%c1, %c0_11, %c0_12] : memref<2x4x1xf32, #tpu.memory_space<vmem>>, vector<1x4x1xf32>
    %15 = arith.mulf %8, %8 : vector<1x4x256xf32>
    %cst_13 = arith.constant dense<0.000000e+00> : vector<1x4xf32>
    %16 = vector.multi_reduction <add>, %15, %cst_13 [2] : vector<1x4x256xf32> to vector<1x4xf32>
    %17 = vector.shape_cast %16 : vector<1x4xf32> to vector<1x4x1xf32>
    %18 = arith.addf %14, %17 : vector<1x4x1xf32>
    %c1_14 = arith.constant 1 : index
    %c0_15 = arith.constant 0 : index
    %c0_16 = arith.constant 0 : index
    %19 = vector.load %arg5[%c1_14, %c0_15, %c0_16] : memref<2x4x1xf32, #tpu.memory_space<vmem>>, vector<1x4x1xf32>
    tpu.vector_store %arg5[%c1_14, %c0_15, %c0_16], %18 {strides = array<i32>} : memref<2x4x1xf32, #tpu.memory_space<vmem>>, vector<1x4x1xf32>,
    %20 = arith.extui %5 : i1 to i32
    %c0_i32_17 = arith.constant 0 : i32
    %21 = arith.cmpi ne, %20, %c0_i32_17 : i32
    scf.if %21 {
      %c0_18 = arith.constant 0 : index
      %c0_19 = arith.constant 0 : index
      %c0_20 = arith.constant 0 : index
      %22 = vector.load %arg5[%c0_18, %c0_19, %c0_20] : memref<2x4x1xf32, #tpu.memory_space<vmem>>, vector<1x4x1xf32>
      %cst_21 = arith.constant 0.001953125 : f32
      %23 = vector.broadcast %cst_21 : f32 to vector<1x4x1xf32>
      %24 = arith.mulf %22, %23 : vector<1x4x1xf32>
      %c1_22 = arith.constant 1 : index
      %c0_23 = arith.constant 0 : index
      %c0_24 = arith.constant 0 : index
      %25 = vector.load %arg5[%c1_22, %c0_23, %c0_24] : memref<2x4x1xf32, #tpu.memory_space<vmem>>, vector<1x4x1xf32>
      %cst_25 = arith.constant 0.001953125 : f32
      %26 = vector.broadcast %cst_25 : f32 to vector<1x4x1xf32>
      %27 = arith.mulf %25, %26 : vector<1x4x1xf32>
      %28 = arith.mulf %24, %24 : vector<1x4x1xf32>
      %29 = arith.subf %27, %28 : vector<1x4x1xf32>
      %cst_26 = arith.constant 0.000000e+00 : f32
      %30 = vector.broadcast %cst_26 : f32 to vector<1x4x1xf32>
      %31 = arith.maximumf %29, %30 : vector<1x4x1xf32>
      %c0_27 = arith.constant 0 : index
      %c0_28 = arith.constant 0 : index
      %c0_29 = arith.constant 0 : index
      %32 = vector.load %arg3[%c0_27, %c0_28, %c0_29] : memref<1x4x1xf32, #tpu.memory_space<vmem>>, vector<1x4x1xf32>
      %cst_30 = arith.constant 9.99999974E-6 : f32
      %33 = vector.broadcast %cst_30 : f32 to vector<1x4x1xf32>
      %34 = arith.addf %31, %33 : vector<1x4x1xf32>
      %35 = math.rsqrt %34 : vector<1x4x1xf32>
      %36 = arith.mulf %32, %35 : vector<1x4x1xf32>
      %c0_31 = arith.constant 0 : index
      %c0_32 = arith.constant 0 : index
      %c0_33 = arith.constant 0 : index
      %37 = vector.load %arg4[%c0_31, %c0_32, %c0_33] : memref<1x4x1xf32, #tpu.memory_space<vmem>>, vector<1x4x1xf32>
      %38 = arith.mulf %24, %36 : vector<1x4x1xf32>
      %39 = arith.subf %37, %38 : vector<1x4x1xf32>
      %c0_34 = arith.constant 0 : index
      %c0_35 = arith.constant 0 : index
      %c0_36 = arith.constant 0 : index
      %40 = vector.load %arg5[%c0_34, %c0_35, %c0_36] : memref<2x4x1xf32, #tpu.memory_space<vmem>>, vector<1x4x1xf32>
      tpu.vector_store %arg5[%c0_34, %c0_35, %c0_36], %36 {strides = array<i32>} : memref<2x4x1xf32, #tpu.memory_space<vmem>>, vector<1x4x1xf32>,
      %c1_37 = arith.constant 1 : index
      %c0_38 = arith.constant 0 : index
      %c0_39 = arith.constant 0 : index
      %41 = vector.load %arg5[%c1_37, %c0_38, %c0_39] : memref<2x4x1xf32, #tpu.memory_space<vmem>>, vector<1x4x1xf32>
      tpu.vector_store %arg5[%c1_37, %c0_38, %c0_39], %39 {strides = array<i32>} : memref<2x4x1xf32, #tpu.memory_space<vmem>>, vector<1x4x1xf32>,
    } else {
    }
    return
  }
  func.func @transform_0(%arg0: i32, %arg1: i32) -> (i32, i32, i32) {
    %c0_i32 = arith.constant 0 : i32
    %c0_i32_0 = arith.constant 0 : i32
    return %arg0, %c0_i32, %arg1 : i32, i32, i32
  }
  func.func @transform_1(%arg0: i32, %arg1: i32) -> (i32, i32, i32) {
    %c0_i32 = arith.constant 0 : i32
    %c0_i32_0 = arith.constant 0 : i32
    %c0_i32_1 = arith.constant 0 : i32
    %c0_i32_2 = arith.constant 0 : i32
    return %c0_i32, %c0_i32_0, %c0_i32_1 : i32, i32, i32
  }
  func.func @transform_2(%arg0: i32, %arg1: i32) -> (i32, i32, i32) {
    %c0_i32 = arith.constant 0 : i32
    %c0_i32_0 = arith.constant 0 : i32
    %c0_i32_1 = arith.constant 0 : i32
    %c0_i32_2 = arith.constant 0 : i32
    return %c0_i32, %c0_i32_0, %c0_i32_1 : i32, i32, i32
  }
  func.func @transform_3(%arg0: i32, %arg1: i32) -> (i32, i32, i32) {
    %c0_i32 = arith.constant 0 : i32
    %c0_i32_0 = arith.constant 0 : i32
    %c0_i32_1 = arith.constant 0 : i32
    %c0_i32_2 = arith.constant 0 : i32
    return %c0_i32, %c0_i32_0, %c0_i32_1 : i32, i32, i32
  }
}

</mosaic_0001>

<bundles_post_ra>
// kernel: tpu_custom_call.1
= control target key start
LH: loop header
LB: loop body
LE: loop exit
PB: predicated region body
PF: predicated region fallthrough
CT: control target
= control target key end

     0   :  { %8 = vsyncpa [#allocation3], 0  ;;  %s623_s0 = inlined_call_operand.hbm [shape: f32[2,4,256], index: 0, kind: input, shape index: {}]   ;;  %s624_s1 = inlined_call_operand.vmem [shape: f32[1,4,1], index: 1, kind: input, shape index: {}]   ;;  %s625_s2 = inlined_call_operand.vmem [shape: f32[1,4,1], index: 2, kind: input, shape index: {}]   ;;  %s626_s3 = inlined_call_operand.vmem [shape: f32[2,4,1], index: 3, kind: output, shape index: {}]  }
   0x1   :  { %10 = vsyncpa [#allocation3 + $0x1], 0  ;;  %s496_s12 = smov 0   ;;  %s498_s13 = smov 0  }
   0x2   :  { %s500_s14 = smov 0   ;;  %s502_s15 = smov 0  }
   0x3   :  { %s504_s16 = smov 0   ;;  %s506_s17 = smov 0  }
   0x4 LB: > { %s316_s18 = sadd.s32 4294967295, %s473_s17   ;;  %s28_s19 = sadd.s32 1, %s469_s16  ;;  %s473_s17 = sphi %s506_s17, %s16_s17   ;;  %s469_s16 = sphi %s504_s16, %s633_s16   ;;  %s465_s15 = sphi %s502_s15, %s632_s15   ;;  %s461_s14 = sphi %s500_s14, %s631_s14   ;;  %s457_s13 = sphi %s498_s13, %s630_s13   ;;  %s453_s12 = sphi %s496_s12, %s629_s12  }
   0x5   : > { %p30_p0 = scmp.ge.s32.totalorder %s28_s19, 2  ;;  %s37_s20 = sadd.s32 1, %s461_s14 }
   0x6   : > { %p44_p1 = scmp.ne.s32.totalorder %s461_s14, %s457_s13  ;;  %p45_p2 = scmp.eq.s32.totalorder %s473_s17, 0 }
   0x7   : > { %s635_s19 = smov (%p30_p0, %s28_s19), 0  ;;  %p50_p4 = scmp.ne.s32.totalorder %s457_s13, %s453_s12 }
   0x8   : > { %p532_p3 = por %p45_p2, %p44_p1  ;;  %s32_s22 = ssub.s32 %s469_s16, %s635_s19 }
   0x9   : > { %p51_p5 = scmp.eq.s32.totalorder %s316_s18, 0  ;;  %p35_p6 = scmp.eq.s32.totalorder %s32_s22, 0 }
   0xa   : > { %p341_p8 = scmp.lt.s32.totalorder %s473_s17, 2  ;;  %s143_s25 = sand.u32 1, %s461_s14  }
   0xb   : > { %p539_p7 = por %p51_p5, %p50_p4  ;;  %s332_s26 = sshll.u32 %s469_s16, 3 }
   0xc   : > { %s545_s24 = scalar_select %p35_p6, %s461_s14, %s37_s20  }
   0xd   : > { %s319_s27 = sshll.u32 %s143_s25, 3  ;;  %s154_s30 = scalar_lea.hbm %s623_s0, %s332_s26 }
   0xe   : > { %s156_s4 = sshll.u32 %s154_s30, 4  ;;  %s147_s5 = scalar_lea.vmem [#allocation2], %s319_s27  ;;  %s157_s4 = int_to_ptr.hbm [resolvable:$true] %s156_s4 }
   0xf   : > { %s158_s6 = sshll.u32 %s147_s5, 4  ;;  %p338_p9 = pnand %p341_p8, %p532_p3  ;;  %s159_s6 = int_to_ptr.vmem [resolvable:$true] %s158_s6 }
  0x10   : > { %p322_p10 = scmp.ge.s32.totalorder %s473_s17, 1  ;;  %p163_p11 = scmp.lt.s32.totalorder %s473_s17, 3 }
  0x11   : > { %s144_s7 = scalar_lea.sflag [#allocation3], %s143_s25 }
  0x12   : > { %340 = dma.hbm_to_vmem [thread:$0]  (!%p338_p9), %s157_s4, 128, %s159_s6, %s144_s7  }
  0x13   : > { %p164_p12 = pnand %p322_p10, %p163_p11 }
  0x14   : > { %s169_s8 = sand.u32 (!%p164_p12), 1, %s457_s13  }
  0x15   : > { %167 = sbr.rel (%p164_p12) target bundleno = 213 (0xd5), region = 32  ;;  %s323_s9 = sshll.u32 (!%p164_p12), %s169_s8, 3 }
  0x16   : > { %s170_s10 = scalar_lea.sflag (!%p164_p12), [#allocation3], %s169_s8  ;;  %s173_s11 = scalar_lea.vmem (!%p164_p12), [#allocation2], %s323_s9 }
  0x1a   : > { %448 = dma.done.wait (%p539_p7), %s170_s10, 128  }
  0x1b   : > { %450 = vsyncadd (%p539_p7), %s170_s10, 4294967168  ;;  %p193_p13 = scmp.eq.s32.totalorder %s465_s15, 0  ;;  %p197_p0 = scmp.eq.s32.totalorder %s465_s15, 1 }
  0x1c   : > { %vm202_vm0 = vcmask (%p193_p13), 3072   ;;  %v475_v0 = vmov (%p193_p13), 0.0  }
  0x1d   : > { %201 = sbr.rel (!%p193_p13) target bundleno = 34 (0x22), region = 40  ;;  %203 = vst.msk [vmem:[%s626_s3] sm:$0xf] (%p193_p13), %vm202_vm0, %v475_v0 }
  0x1e   : > { %204 = vst.msk [vmem:[%s626_s3 + $0x4] sm:$0xf] (%p193_p13), %vm202_vm0, %v475_v0 }
  0x22 PF: > { %v205_v1 = vld [vmem:[%s173_s11] sm:$0xff]  ;;  %vm213_vm1 = vcmask 1043456   ;;  %vm220_vm2 = vcmask 3072   ;;  %v247_v32 = vld [vmem:[%s624_s1] sm:$0xf] (%p197_p0) }
  0x23   : > { %208 = vst [vmem:[#allocation1] ss:$2 sm:$0xff] %v205_v1  ;;  %v224_v2 = vmul.f32 %v205_v1, %v205_v1  ;;  %v260_v36 = vld [vmem:[%s625_s2] sm:$0xf] (%p197_p0) }
  0x24   : > { %v206_v13 = vld [vmem:[%s626_s3] sm:$0xf] }
  0x25   : > { %v326_v16 = vld [vmem:[%s626_s3 + $0x4] sm:$0xf] }
  0x2a   : > { %v209_v3 = vld.sshfl [vmem:[#allocation1] sm:$0xff pattern:$0x75316420]  ;;  %v210_v4 = vld.sshfl [vmem:[#allocation1 + $0x8] sm:$0xff pattern:$0x75316420] }
  0x2b   : > { %v214_v5 = vsel %vm213_vm1, %v209_v3, 0.0  ;;  %v215_v6 = vsel %vm213_vm1, %v210_v4, 0.0  ;;  %226 = vst [vmem:[#allocation1] ss:$2 sm:$0xff] %v224_v2 }
  0x2c   : > { %v216_v7 = vadd.f32 %v215_v6, %v214_v5 }
  0x2e   : > { %217 = vadd.xlane.f32.xlu0 %v216_v7 }
  0x32   : > { %v227_v8 = vld.sshfl [vmem:[#allocation1] sm:$0xff pattern:$0x75316420]  ;;  %v228_v9 = vld.sshfl [vmem:[#allocation1 + $0x8] sm:$0xff pattern:$0x75316420] }
  0x33   : > { %v231_v10 = vsel %vm213_vm1, %v227_v8, 0.0  ;;  %v232_v11 = vsel %vm213_vm1, %v228_v9, 0.0 }
  0x34   : > { %v233_v12 = vadd.f32 %v232_v11, %v231_v10 }
  0x36   : > { %234 = vadd.xlane.f32.xlu0 %v233_v12 }
  0xa1   : > { %v218_v14 = vpop.xlane.xlu0 %217 }
  0xa2   : > { %v219_v15 = vadd.f32 %v218_v14, %v206_v13 }
  0xa4   : > { %221 = vst.msk [vmem:[%s626_s3] sm:$0xf] %vm220_vm2, %v219_v15 }
  0xa8   : > { %239 = sbr.rel (!%p197_p0) target bundleno = 213 (0xd5), region = 44 }
  0xa9   : > { %v235_v17 = vpop.xlane.xlu0 %234 }
  0xaa   : > { %v236_v18 = vadd.f32 %v326_v16, %v235_v17 }
  0xab   : > { %v240_v19 = vld [vmem:[%s626_s3] sm:$0xf] (%p197_p0) }
  0xac   : > { %327 = vst.msk [vmem:[%s626_s3 + $0x4] sm:$0xf] %vm220_vm2, %v236_v18  ;;  %v241_v21 = vmul.f32 (%p197_p0), 0.001953125, %v240_v19 }
  0xae   : > { %v244_v23 = vmul.f32 %v241_v21, %v241_v21 }
  0xb3   : > { %v328_v20 = vld [vmem:[%s626_s3 + $0x4] sm:$0xf] }
  0xb4   : > { %v243_v22 = vmul.f32 0.001953125, %v328_v20 }
  0xb6   : > { %v245_v24 = vsub.f32 %v243_v22, %v244_v23 }
  0xb8   : > { %v246_v25 = vmax.f32 %v245_v24, 0.0 }
  0xba   : > { %v248_v26 = vadd.f32 1e-05, %v246_v25 }
  0xbc   : > { %391 = vrsqrt.f32 %v248_v26  ;;  %vm255_vm3 = vweird.f32 %v248_v26 }
  0xc2   : > { %v392_v27 = vpop.eup %391 }
  0xc3   : > { %v250_v28 = vmul.f32 %v392_v27, %v248_v26  ;;  %vm256_vm4 = vweird.f32 %v392_v27 }
  0xc4   : > { %vm257_vm5 = vmor %vm255_vm3, %vm256_vm4 }
  0xc5   : > { %v251_v29 = vmul.f32 %v392_v27, %v250_v28 }
  0xc7   : > { %v252_v30 = vmul.f32 0.5, %v251_v29 }
  0xc9   : > { %v253_v31 = vsub.f32 1.5, %v252_v30 }
  0xcb   : > { %v254_v33 = vmul.f32 %v392_v27, %v253_v31 }
  0xcd   : > { %v258_v34 = vsel %vm257_vm5, %v392_v27, %v254_v33 }
  0xce   : > { %v259_v35 = vmul.f32 %v258_v34, %v247_v32 }
  0xd0   : > { %263 = vst.msk [vmem:[%s626_s3] sm:$0xf] %vm220_vm2, %v259_v35  ;;  %v261_v37 = vmul.f32 %v259_v35, %v241_v21 }
  0xd2   : > { %v262_v38 = vsub.f32 %v260_v36, %v261_v37 }
  0xd4   : > { %329 = vst.msk [vmem:[%s626_s3 + $0x4] sm:$0xf] %vm220_vm2, %v262_v38 }
  0xd5 PF: > { %s16_s17 = sadd.s32 1, %s473_s17   ;;  %s629_s12 = smov %s457_s13 }
  0xd6   : > { %p13_p1 = scmp.ge.s32.totalorder %s16_s17, 4   ;;  %s630_s13 = smov %s461_s14 }
  0xd7   : > { %s631_s14 = smov %s545_s24  ;;  %s632_s15 = smov %s469_s16 }
  0xd8   : > { %s633_s16 = smov %s635_s19  ;;  %15 = sbr.rel (!%p13_p1) target bundleno = 4 (0x4), region = 77 }
  0xdd   :  { %276 = vsyncpa [#allocation3], 1 }
  0xde   :  { %278 = vsyncpa [#allocation3 + $0x1], 1 }

</bundles_post_ra>
